<compile_context>
chip_gen: v6e
topology: v6e:2x2x1
jax: 0.10.0
libtpu: 0.0.40
codegen_flags: <defaults>
</compile_context>

<pallas_src>
import functools

import jax
import jax.numpy as jnp
from jax import lax
from jax.experimental import pallas as pl
from jax.experimental.pallas import tpu as pltpu

# Finite "-inf" fill: masked entries still underflow to exactly 0 after softmax,
# but fully-masked rows degrade to a uniform distribution instead of NaN.
_NEG_LARGE = float(jnp.finfo(jnp.float32).min)


def _sdpa_kernel(*refs, scale, has_mask, tk, nk, return_attention, mxu_bf16):
    # ---- unpack refs: inputs, outputs, scratches ---------------------------
    q_ref, k_ref, v_ref = refs[:3]
    idx = 3
    mask_ref = None
    if has_mask:
        mask_ref = refs[idx]
        idx += 1
    ctx_ref = refs[idx]
    idx += 1
    attn_ref = None
    if return_attention:
        attn_ref = refs[idx]
        idx += 1
    m_sc, l_sc, acc_sc = refs[idx], refs[idx + 1], refs[idx + 2]
    idx += 3
    e_sc = refs[idx] if (return_attention and nk > 1) else None

    # MXU operand dtypes: keep native dtype (bf16 inputs stay bf16). For f32
    # inputs the optional mxu_bf16 flag trades a little precision for full MXU
    # rate (multi-pass f32 -> single-pass bf16 with f32 accumulation).
    qk_dtype = q_ref.dtype
    pv_dtype = v_ref.dtype
    if mxu_bf16:
        if qk_dtype == jnp.float32:
            qk_dtype = jnp.bfloat16
        if pv_dtype == jnp.float32:
            pv_dtype = jnp.bfloat16

    q = q_ref[...]                                   # (tq, D)
    if scale is not None:
        # Fold the scalar scale into q once (tq*D multiplies, not tq*Lk).
        q = q * jnp.asarray(scale, dtype=q.dtype)
    q = q.astype(qk_dtype)

    def scores_chunk(start):
        # scores = q @ k_chunk^T, contracting D (no XLU transpose), f32 accumulate.
        kc = k_ref[pl.ds(start, tk), :].astype(qk_dtype)
        s = lax.dot_general(q, kc, (((1,), (1,)), ((), ())),
                            preferred_element_type=jnp.float32)  # (tq, tk) f32
        if has_mask:
            mc = mask_ref[:, pl.ds(start, tk)]       # (tq, tk) or (1, tk) int8
            s = jnp.where(mc != 0, _NEG_LARGE, s)
        return s

    # dropout(p=0.0) is the identity.
    # TODO(synk): dropout with p > 0 would need pltpu.prng_seed/prng_random_bits.

    if nk == 1:
        # Short key axis: single chunk, no loops, no staging scratch.
        s = scores_chunk(0)                          # (tq, Lk) f32
        m = jnp.max(s, axis=-1, keepdims=True)
        e = jnp.exp(s - m)
        l = jnp.sum(e, axis=-1, keepdims=True)
        inv_l = pl.reciprocal(l, approx=True)        # EUP slot, otherwise idle
        vv = v_ref[...].astype(pv_dtype)
        if return_attention:
            attn = e * inv_l
            ctx = jnp.dot(attn.astype(pv_dtype), vv,
                          preferred_element_type=jnp.float32)
            attn_ref[...] = attn.astype(attn_ref.dtype)
        else:
            ctx = jnp.dot(e.astype(pv_dtype), vv,
                          preferred_element_type=jnp.float32) * inv_l
        ctx_ref[...] = ctx.astype(ctx_ref.dtype)
        return

    # ---- nk > 1: chunk the key axis (tk is a multiple of 128 by construction)
    # so live f32 temporaries stay O(tq*tk) regardless of Lk.
    m_sc[...] = jnp.full_like(m_sc, _NEG_LARGE)
    l_sc[...] = jnp.zeros_like(l_sc)
    acc_sc[...] = jnp.zeros_like(acc_sc)

    def chunk_start(ci):
        return pl.multiple_of(ci * tk, 128)          # lane-aligned dynamic offset

    if return_attention:
        # Pass 1: masked scores per chunk -> staging scratch, running row max.
        @pl.loop(0, nk)
        def _(ci):
            start = chunk_start(ci)
            s = scores_chunk(start)
            e_sc[:, pl.ds(start, tk)] = s
            m_sc[...] = jnp.maximum(m_sc[...],
                                    jnp.max(s, axis=-1, keepdims=True))

        # Pass 2: e = exp(s - m); accumulate denominator + unnormalized context.
        @pl.loop(0, nk)
        def _(ci):
            start = chunk_start(ci)
            e = jnp.exp(e_sc[:, pl.ds(start, tk)] - m_sc[...])
            e_sc[:, pl.ds(start, tk)] = e
            l_sc[...] += jnp.sum(e, axis=-1, keepdims=True)
            vc = v_ref[pl.ds(start, tk), :].astype(pv_dtype)
            acc_sc[...] += jnp.dot(e.astype(pv_dtype), vc,
                                   preferred_element_type=jnp.float32)

        inv_l = pl.reciprocal(l_sc[...], approx=True)
        ctx_ref[...] = (acc_sc[...] * inv_l).astype(ctx_ref.dtype)

        # Pass 3: normalized attention writeback, chunk by chunk (lane-aligned).
        @pl.loop(0, nk)
        def _(ci):
            start = chunk_start(ci)
            attn_ref[:, pl.ds(start, tk)] = (
                e_sc[:, pl.ds(start, tk)] * inv_l).astype(attn_ref.dtype)
    else:
        # Context-only: single-pass online softmax (flash-style); nothing O(Lk) kept.
        @pl.loop(0, nk)
        def _(ci):
            start = chunk_start(ci)
            s = scores_chunk(start)
            m_prev = m_sc[...]
            m_new = jnp.maximum(m_prev, jnp.max(s, axis=-1, keepdims=True))
            alpha = jnp.exp(m_prev - m_new)
            p = jnp.exp(s - m_new)
            l_sc[...] = alpha * l_sc[...] + jnp.sum(p, axis=-1, keepdims=True)
            vc = v_ref[pl.ds(start, tk), :].astype(pv_dtype)
            acc_sc[...] = alpha * acc_sc[...] + jnp.dot(
                p.astype(pv_dtype), vc, preferred_element_type=jnp.float32)
            m_sc[...] = m_new

        ctx_ref[...] = (acc_sc[...] *
                        pl.reciprocal(l_sc[...], approx=True)).astype(ctx_ref.dtype)


# --------------------------------------------------------------------------- #
# Wrapper
# --------------------------------------------------------------------------- #
def _device_kind():
    try:
        return jax.devices()[0].device_kind.lower()
    except Exception:
        return ""


def _vmem_capacity_bytes():
    try:
        return int(pltpu.get_tpu_info().vmem_capacity_bytes)
    except Exception:
        return 64 << 20   # conservative: smallest supported chip (v7x)


def _pick_tile(length, target, multiple):
    """Largest divisor of `length` that is <= target and a multiple of `multiple`.

    Falls back to `length` (the whole axis) when no such divisor exists.
    """
    t = (min(target, length) // multiple) * multiple
    while t >= multiple:
        if length % t == 0:
            return t
        t -= multiple
    return length


def _vmem_estimate(tq, tk, Lk, D, Dv, itemsize, has_mask, mask_rows,
                   return_attention, kv_buffers):
    est = 2 * tq * D * itemsize                       # q blocks (double-buffered)
    est += kv_buffers * Lk * D * itemsize             # k blocks
    est += kv_buffers * Lk * Dv * itemsize            # v blocks
    if has_mask:
        est += 2 * mask_rows * Lk                     # int8 mask blocks
    est += 2 * tq * Dv * itemsize                     # ctx output blocks
    if return_attention:
        est += 2 * tq * Lk * itemsize                 # attn output blocks
        est += tq * Lk * 4                            # exp(scores) staging scratch
    est += tq * Dv * 4 + 2 * tq * 128 * 4             # acc + m/l scratches (padded)
    est += 4 * tq * tk * 4                            # per-chunk f32 temporaries
    return est


def scale_dot_product_attention(q, k, v, scale=None, attn_mask=None, *,
                                return_attention=True,
                                mxu_bf16_operands=False,
                                key_chunk_target=512):
    """JAX/Pallas equivalent of ScaleDotProductAttention.forward (dropout=0.0).

    Returns (context, attention) when return_attention=True (module semantics).
    With return_attention=False only the context is returned, skipping the
    [B, Lq, Lk] attention HBM writeback (the dominant memory-traffic term).
    """
    B, Lq, D = q.shape
    Bk, Lk, Dk = k.shape
    Bv, Lv, Dv = v.shape
    assert B == Bk == Bv and D == Dk and Lk == Lv

    has_mask = attn_mask is not None
    use_scale = bool(scale)          # mirrors torch's `if scale:` (0.0 -> no scale)
    itemsize = jnp.dtype(q.dtype).itemsize

    mask = None
    mask_broadcast = False
    if has_mask:
        mask = attn_mask.astype(jnp.int8)             # 4x less DMA than int32
        assert mask.ndim == 3 and mask.shape[0] == B and mask.shape[2] == Lk
        mask_broadcast = mask.shape[1] == 1
        if not mask_broadcast:
            assert mask.shape[1] == Lq

    # ---- chip-aware tiling --------------------------------------------------
    kind = _device_kind()
    # v6e / v7x MXUs are 2x256^2 -> tq=256 fills the M dim; v5e (4x128^2) -> 128.
    tq_target = 256 if ("v6" in kind or "v7" in kind) else 128
    # Sublane packing: f32 packs 8 rows / vreg, bf16 16; a per-query int8 mask 32.
    sublane = {4: 8, 2: 16, 1: 32}.get(itemsize, 8)
    if has_mask and not mask_broadcast:
        sublane = max(sublane, 32)

    # Key chunk: a multiple of 128 lanes dividing Lk (falls back to the full axis).
    tk = _pick_tile(Lk, max(int(key_chunk_target), 128), 128)
    nk = Lk // tk

    # Single-buffer K/V when their per-batch blocks are big: the block index
    # changes only once per batch element, so double-buffering just burns VMEM
    # (matters most on v7x's 64 MiB VMEM).
    kv_buffers = 1 if Lk * (D + Dv) * itemsize > (8 << 20) else 2

    vmem_budget = max(_vmem_capacity_bytes() - (8 << 20), 16 << 20)

    tq = _pick_tile(Lq, tq_target, sublane)
    while True:
        mrows = 1 if mask_broadcast else tq
        est = _vmem_estimate(tq, tk, Lk, D, Dv, itemsize, has_mask, mrows,
                             return_attention, kv_buffers)
        if est <= vmem_budget or tq <= sublane:
            break
        smaller = _pick_tile(Lq, max(tq // 2, sublane), sublane)
        if smaller >= tq:
            break
        tq = smaller
    nq = Lq // tq
    vmem_limit = int(min(vmem_budget, max(est + (4 << 20), 16 << 20)))

    # ---- specs --------------------------------------------------------------
    def _kv_spec(last_dim):
        kwargs = {}
        if kv_buffers == 1:
            kwargs["pipeline_mode"] = pl.Buffered(1)
        return pl.BlockSpec((None, Lk, last_dim), lambda b, qi: (b, 0, 0), **kwargs)

    in_specs = [
        pl.BlockSpec((None, tq, D), lambda b, qi: (b, qi, 0)),
        _kv_spec(D),
        _kv_spec(Dv),
    ]
    inputs = [q, k, v]
    if has_mask:
        if mask_broadcast:
            # Broadcastable key-padding mask: don't materialize [B, Lq, Lk].
            in_specs.append(pl.BlockSpec((None, 1, Lk), lambda b, qi: (b, 0, 0)))
        else:
            in_specs.append(pl.BlockSpec((None, tq, Lk), lambda b, qi: (b, qi, 0)))
        inputs.append(mask)

    # TODO(synk): for multi-head callers, fold heads into Dv (>= 128 lanes) before
    # calling so the context writeback and the attn@v MXU op are lane-dense.
    ctx_spec = pl.BlockSpec((None, tq, Dv), lambda b, qi: (b, qi, 0))
    ctx_shape = jax.ShapeDtypeStruct((B, Lq, Dv), q.dtype)
    if return_attention:
        attn_spec = pl.BlockSpec((None, tq, Lk), lambda b, qi: (b, qi, 0))
        attn_shape = jax.ShapeDtypeStruct((B, Lq, Lk), q.dtype)  # torch.bmm dtype
        out_specs = [ctx_spec, attn_spec]
        out_shape = (ctx_shape, attn_shape)
    else:
        out_specs = ctx_spec
        out_shape = ctx_shape

    scratch_shapes = [
        pltpu.VMEM((tq, 1), jnp.float32),     # running row max
        pltpu.VMEM((tq, 1), jnp.float32),     # softmax denominator
        pltpu.VMEM((tq, Dv), jnp.float32),    # f32 context accumulator
    ]
    if return_attention and nk > 1:
        scratch_shapes.append(pltpu.VMEM((tq, Lk), jnp.float32))  # staged exp(scores)

    kernel = functools.partial(
        _sdpa_kernel,
        scale=float(scale) if use_scale else None,
        has_mask=has_mask,
        tk=tk,
        nk=nk,
        return_attention=return_attention,
        mxu_bf16=mxu_bf16_operands,
    )

    grid_spec = pltpu.PrefetchScalarGridSpec(
        num_scalar_prefetch=0,
        grid=(B, nq),
        in_specs=in_specs,
        out_specs=out_specs,
        scratch_shapes=scratch_shapes,
    )

    # Megacore (v7x): shard the batch axis across TensorCores so each core keeps
    # its own K/V resident; the query-tile axis runs as an in-core loop.
    dims = ("parallel", "arbitrary") if B >= 2 else ("parallel", "parallel")

    outs = pl.pallas_call(
        kernel,
        out_shape=out_shape,
        grid_spec=grid_spec,
        compiler_params=pltpu.CompilerParams(
            dimension_semantics=dims,
            vmem_limit_bytes=vmem_limit,
        ),
    )(*inputs)

    if return_attention:
        context, attention = outs
        return context, attention
    return outs


# --------------------------------------------------------------------------- #
# Reference + self-test
# --------------------------------------------------------------------------- #
def _reference(q, k, v, scale=None, attn_mask=None):
    scores = jnp.einsum("bqd,bkd->bqk", q.astype(jnp.float32), k.astype(jnp.float32))
    if scale:
        scores = scores * scale
    if attn_mask is not None:
        scores = jnp.where(attn_mask != 0, -jnp.inf, scores)
    attn = jax.nn.softmax(scores, axis=-1)
    ctx = jnp.einsum("bqk,bkd->bqd", attn, v.astype(jnp.float32))
    return ctx.astype(q.dtype), attn.astype(q.dtype)


if __name__ == "__main__":
    key = jax.random.PRNGKey(0)
    kq, kk, kv, km, kq2, kk2, kv2, km2 = jax.random.split(key, 8)

    # Small shapes consistent with the module.
    B, Lq, Lk, D, Dv = 2, 8, 8, 32, 32
    q = jax.random.normal(kq, (B, Lq, D), dtype=jnp.float32)
    k = jax.random.normal(kk, (B, Lk, D), dtype=jnp.float32)
    v = jax.random.normal(kv, (B, Lk, Dv), dtype=jnp.float32)
    scale = 1.0 / (D ** 0.5)

    # attn_mask: 1 => masked (torch masked_fill_); keep >=1 unmasked key per row.
    attn_mask = (jax.random.uniform(km, (B, Lq, Lk)) > 0.7).astype(jnp.int32)
    attn_mask = attn_mask.at[:, :, 0].set(0)

    # 1) Masked + scaled, returning (context, attention) like the module.
    ctx, attn = scale_dot_product_attention(q, k, v, scale=scale, attn_mask=attn_mask)
    jax.block_until_ready((ctx, attn))
    ctx_r, attn_r = _reference(q, k, v, scale=scale, attn_mask=attn_mask)
    assert jnp.allclose(ctx, ctx_r, atol=2e-3, rtol=2e-3), "context mismatch (masked)"
    assert jnp.allclose(attn, attn_r, atol=2e-3, rtol=2e-3), "attention mismatch (masked)"

    # 2) No-mask path.
    ctx2, attn2 = scale_dot_product_attention(q, k, v, scale=scale)
    jax.block_until_ready((ctx2, attn2))
    ctx2_r, attn2_r = _reference(q, k, v, scale=scale)
    assert jnp.allclose(ctx2, ctx2_r, atol=2e-3, rtol=2e-3), "context mismatch (no mask)"
    assert jnp.allclose(attn2, attn2_r, atol=2e-3, rtol=2e-3), "attention mismatch (no mask)"

    # 3) Context-only (flash-style) path: no dense attention writeback.
    ctx3 = scale_dot_product_attention(q, k, v, scale=scale, attn_mask=attn_mask,
                                       return_attention=False)
    jax.block_until_ready(ctx3)
    assert jnp.allclose(ctx3, ctx_r, atol=2e-3, rtol=2e-3), "context mismatch (ctx-only)"

    # 4) Multi-chunk key axis (exercises the in-kernel Lk chunking loops).
    B2, Lq2, Lk2, D2, Dv2 = 2, 32, 256, 32, 32
    q2 = jax.random.normal(kq2, (B2, Lq2, D2), dtype=jnp.float32)
    k2 = jax.random.normal(kk2, (B2, Lk2, D2), dtype=jnp.float32)
    v2 = jax.random.normal(kv2, (B2, Lk2, Dv2), dtype=jnp.float32)
    mask2 = (jax.random.uniform(km2, (B2, Lq2, Lk2)) > 0.8).astype(jnp.int32)
    mask2 = mask2.at[:, :, 0].set(0)
    scale2 = 1.0 / (D2 ** 0.5)

    ctx4, attn4 = scale_dot_product_attention(q2, k2, v2, scale=scale2,
                                              attn_mask=mask2, key_chunk_target=128)
    ctx5 = scale_dot_product_attention(q2, k2, v2, scale=scale2, attn_mask=mask2,
                                       return_attention=False, key_chunk_target=128)
    jax.block_until_ready((ctx4, attn4, ctx5))
    ctx4_r, attn4_r = _reference(q2, k2, v2, scale=scale2, attn_mask=mask2)
    assert jnp.allclose(ctx4, ctx4_r, atol=2e-3, rtol=2e-3), "context mismatch (chunked)"
    assert jnp.allclose(attn4, attn4_r, atol=2e-3, rtol=2e-3), "attention mismatch (chunked)"
    assert jnp.allclose(ctx5, ctx4_r, atol=2e-3, rtol=2e-3), "context mismatch (chunked, ctx-only)"

    print("KERNEL_OK")
</pallas_src>

<mosaic_0001>
module attributes {stable_mosaic.version = 11 : i64} {
  func.func @_sdpa_kernel(%arg0: i32, %arg1: i32, %arg2: memref<1x8x32xf32, #tpu.memory_space<vmem>>, %arg3: memref<1x8x32xf32, #tpu.memory_space<vmem>>, %arg4: memref<1x8x32xf32, #tpu.memory_space<vmem>>, %arg5: memref<1x8x8xi8, #tpu.memory_space<vmem>>, %arg6: memref<1x8x32xf32, #tpu.memory_space<vmem>>, %arg7: memref<1x8x8xf32, #tpu.memory_space<vmem>>, %arg8: memref<8x1xf32, #tpu.memory_space<vmem>>, %arg9: memref<8x1xf32, #tpu.memory_space<vmem>>, %arg10: memref<8x32xf32, #tpu.memory_space<vmem>>) attributes {dimension_semantics = [#tpu.dimension_semantics<parallel>, #tpu.dimension_semantics<arbitrary>], iteration_bounds = array<i64: 2, 1>, scalar_prefetch = 0 : i64, scratch_operands = 3 : i64, tpu.core_type = #tpu.core_type<tc>, window_params = [{transform_indices = @transform_0, window_bounds = array<i64: 1, 8, 32>}, {transform_indices = @transform_1, window_bounds = array<i64: 1, 8, 32>}, {transform_indices = @transform_2, window_bounds = array<i64: 1, 8, 32>}, {transform_indices = @transform_3, window_bounds = array<i64: 1, 8, 8>}, {transform_indices = @transform_4, window_bounds = array<i64: 1, 8, 32>}, {transform_indices = @transform_5, window_bounds = array<i64: 1, 8, 8>}]} {
    %c0 = arith.constant 0 : index
    %c0_0 = arith.constant 0 : index
    %c0_1 = arith.constant 0 : index
    %0 = vector.load %arg2[%c0, %c0_0, %c0_1] : memref<1x8x32xf32, #tpu.memory_space<vmem>>, vector<1x8x32xf32>
    %1 = vector.shape_cast %0 : vector<1x8x32xf32> to vector<8x32xf32>
    %cst = arith.constant 0.176776692 : f32
    %2 = vector.broadcast %cst : f32 to vector<8x32xf32>
    %3 = arith.mulf %1, %2 : vector<8x32xf32>
    %c0_2 = arith.constant 0 : index
    %c0_3 = arith.constant 0 : index
    %c0_4 = arith.constant 0 : index
    %4 = vector.load %arg3[%c0_2, %c0_3, %c0_4] : memref<1x8x32xf32, #tpu.memory_space<vmem>>, vector<1x8x32xf32>
    %5 = vector.shape_cast %4 : vector<1x8x32xf32> to vector<8x32xf32>
    %cst_5 = arith.constant dense<0.000000e+00> : vector<8x8xf32>
    %6 = tpu.matmul %3, %5, %cst_5 {dimension_numbers = #tpu.dot_dimension_numbers<[1], [1], [0], [0], [0, 0, 1, 0], [], []>} : vector<8x32xf32>, vector<8x32xf32>, vector<8x8xf32> -> vector<8x8xf32>
    %c0_6 = arith.constant 0 : index
    %c0_7 = arith.constant 0 : index
    %c0_8 = arith.constant 0 : index
    %7 = vector.load %arg5[%c0_6, %c0_7, %c0_8] : memref<1x8x8xi8, #tpu.memory_space<vmem>>, vector<1x8x8xi8>
    %8 = vector.shape_cast %7 : vector<1x8x8xi8> to vector<8x8xi8>
    %c0_i8 = arith.constant 0 : i8
    %9 = vector.broadcast %c0_i8 : i8 to vector<8x8xi8>
    %10 = arith.cmpi ne, %8, %9 : vector<8x8xi8>
    %cst_9 = arith.constant -3.40282347E+38 : f32
    %11 = vector.broadcast %cst_9 : f32 to vector<8x8xf32>
    %12 = arith.select %10, %11, %6 : vector<8x8xi1>, vector<8x8xf32>
    %cst_10 = arith.constant dense<0xFF800000> : vector<8xf32>
    %13 = vector.multi_reduction <maximumf>, %12, %cst_10 [1] : vector<8x8xf32> to vector<8xf32>
    %14 = vector.shape_cast %13 : vector<8xf32> to vector<8x1xf32>
    %15 = vector.broadcast %14 : vector<8x1xf32> to vector<8x8xf32>
    %16 = arith.subf %12, %15 : vector<8x8xf32>
    %17 = math.exp %16 : vector<8x8xf32>
    %cst_11 = arith.constant dense<0.000000e+00> : vector<8xf32>
    %18 = vector.multi_reduction <add>, %17, %cst_11 [1] : vector<8x8xf32> to vector<8xf32>
    %19 = vector.shape_cast %18 : vector<8xf32> to vector<8x1xf32>
    %20 = tpu.reciprocal %19 {approx = true} : vector<8x1xf32> -> vector<8x1xf32>
    %c0_12 = arith.constant 0 : index
    %c0_13 = arith.constant 0 : index
    %c0_14 = arith.constant 0 : index
    %21 = vector.load %arg4[%c0_12, %c0_13, %c0_14] : memref<1x8x32xf32, #tpu.memory_space<vmem>>, vector<1x8x32xf32>
    %22 = vector.shape_cast %21 : vector<1x8x32xf32> to vector<8x32xf32>
    %23 = vector.broadcast %20 : vector<8x1xf32> to vector<8x8xf32>
    %24 = arith.mulf %17, %23 : vector<8x8xf32>
    %cst_15 = arith.constant dense<0.000000e+00> : vector<8x32xf32>
    %25 = tpu.matmul %24, %22, %cst_15 {dimension_numbers = #tpu.dot_dimension_numbers<[1], [0], [0], [1], [0, 0, 1, 1], [], []>} : vector<8x8xf32>, vector<8x32xf32>, vector<8x32xf32> -> vector<8x32xf32>
    %c0_16 = arith.constant 0 : index
    %c0_17 = arith.constant 0 : index
    %c0_18 = arith.constant 0 : index
    %26 = vector.load %arg7[%c0_16, %c0_17, %c0_18] : memref<1x8x8xf32, #tpu.memory_space<vmem>>, vector<1x8x8xf32>
    %27 = vector.shape_cast %26 : vector<1x8x8xf32> to vector<8x8xf32>
    %28 = vector.shape_cast %24 : vector<8x8xf32> to vector<1x8x8xf32>
    tpu.vector_store %arg7[%c0_16, %c0_17, %c0_18], %28 {strides = array<i32>} : memref<1x8x8xf32, #tpu.memory_space<vmem>>, vector<1x8x8xf32>,
    %c0_19 = arith.constant 0 : index
    %c0_20 = arith.constant 0 : index
    %c0_21 = arith.constant 0 : index
    %29 = vector.load %arg6[%c0_19, %c0_20, %c0_21] : memref<1x8x32xf32, #tpu.memory_space<vmem>>, vector<1x8x32xf32>
    %30 = vector.shape_cast %29 : vector<1x8x32xf32> to vector<8x32xf32>
    %31 = vector.shape_cast %25 : vector<8x32xf32> to vector<1x8x32xf32>
    tpu.vector_store %arg6[%c0_19, %c0_20, %c0_21], %31 {strides = array<i32>} : memref<1x8x32xf32, #tpu.memory_space<vmem>>, vector<1x8x32xf32>,
    return
  }
  func.func @transform_0(%arg0: i32, %arg1: i32) -> (i32, i32, i32) {
    %c0_i32 = arith.constant 0 : i32
    %c0_i32_0 = arith.constant 0 : i32
    return %arg0, %arg1, %c0_i32 : i32, i32, i32
  }
  func.func @transform_1(%arg0: i32, %arg1: i32) -> (i32, i32, i32) {
    %c0_i32 = arith.constant 0 : i32
    %c0_i32_0 = arith.constant 0 : i32
    %c0_i32_1 = arith.constant 0 : i32
    return %arg0, %c0_i32, %c0_i32_0 : i32, i32, i32
  }
  func.func @transform_2(%arg0: i32, %arg1: i32) -> (i32, i32, i32) {
    %c0_i32 = arith.constant 0 : i32
    %c0_i32_0 = arith.constant 0 : i32
    %c0_i32_1 = arith.constant 0 : i32
    return %arg0, %c0_i32, %c0_i32_0 : i32, i32, i32
  }
  func.func @transform_3(%arg0: i32, %arg1: i32) -> (i32, i32, i32) {
    %c0_i32 = arith.constant 0 : i32
    %c0_i32_0 = arith.constant 0 : i32
    return %arg0, %arg1, %c0_i32 : i32, i32, i32
  }
  func.func @transform_4(%arg0: i32, %arg1: i32) -> (i32, i32, i32) {
    %c0_i32 = arith.constant 0 : i32
    %c0_i32_0 = arith.constant 0 : i32
    return %arg0, %arg1, %c0_i32 : i32, i32, i32
  }
  func.func @transform_5(%arg0: i32, %arg1: i32) -> (i32, i32, i32) {
    %c0_i32 = arith.constant 0 : i32
    %c0_i32_0 = arith.constant 0 : i32
    return %arg0, %arg1, %c0_i32 : i32, i32, i32
  }
}

</mosaic_0001>

<bundles_post_ra>
// kernel: tpu_custom_call.1
= control target key start
LH: loop header
LB: loop body
LE: loop exit
PB: predicated region body
PF: predicated region fallthrough
CT: control target
= control target key end

     0   :  { %s1355_s0 = inlined_call_operand.hbm [shape: f32[2,8,32], index: 0, kind: input, shape index: {}]   ;;  %s1356_s1 = inlined_call_operand.hbm [shape: f32[2,8,32], index: 1, kind: input, shape index: {}]   ;;  %s1357_s2 = inlined_call_operand.hbm [shape: f32[2,8,32], index: 2, kind: input, shape index: {}]   ;;  %s1358_s3 = inlined_call_operand.vmem [shape: s8[2,8,8], index: 3, kind: input, shape index: {}]   ;;  %s1359_s4 = inlined_call_operand.hbm [shape: f32[2,8,32], index: 4, kind: output, shape index: {0}]   ;;  %s1360_s5 = inlined_call_operand.hbm [shape: f32[2,8,8], index: 5, kind: output, shape index: {1}]  }
   0x1   :  { %1366 = sst [smem:[#allocation22_spill]] %s1356_s1 }
   0x2   :  { %11 = vsyncpa [#allocation6], 0 }
   0x3   :  { %13 = vsyncpa [#allocation6 + $0x1], 0 }
   0x4   :  { %14 = vsyncpa [#allocation9], 0 }
   0x5   :  { %16 = vsyncpa [#allocation9 + $0x1], 0 }
   0x6   :  { %17 = vsyncpa [#allocation7], 0 }
   0x7   :  { %19 = vsyncpa [#allocation7 + $0x1], 0 }
   0x8   :  { %20 = vsyncpa [#allocation13], 0 }
   0x9   :  { %22 = vsyncpa [#allocation13 + $0x1], 0  ;;  %s1112_s18 = smov 0   ;;  %s1114_s19 = smov 0  }
   0xa   :  { %s1116_s20 = smov 0   ;;  %s1118_s21 = smov 0  }
   0xb   :  { %s1120_s22 = smov 0   ;;  %s1122_s23 = smov 0  }
   0xc LB: > { %1367 = sst [smem:[#allocation18_spill]] %s1068_s22  ;;  %s1143_s24 = sadd.s32 4294967295, %s1072_s23   ;;  %s1072_s23 = sphi %s1122_s23, %s28_s23   ;;  %s1068_s22 = sphi %s1120_s22, %s1383_s22   ;;  %s1064_s21 = sphi %s1118_s21, %s1382_s21   ;;  %s1060_s20 = sphi %s1116_s20, %s1386_s20   ;;  %s1056_s19 = sphi %s1114_s19, %s1385_s19   ;;  %s1052_s18 = sphi %s1112_s18, %s1384_s18  }
   0xd   : > { %1368 = sst [smem:[#allocation19_spill]] %s1072_s23  ;;  %s751_s25 = sadd.s32 4294967294, %s1072_s23  }
   0xe   : > { %s40_s26 = sadd.s32 1, %s1068_s22  ;;  %s49_s27 = sadd.s32 1, %s1060_s20 }
   0xf   : > { %p42_p0 = scmp.ge.s32.totalorder %s40_s26, 2  ;;  %p56_p1 = scmp.ne.s32.totalorder %s1060_s20, %s1056_s19 }
  0x10   : > { %p57_p2 = scmp.eq.s32.totalorder %s1072_s23, 0  ;;  %p62_p3 = scmp.ne.s32.totalorder %s1056_s19, %s1052_s18 }
  0x11   : > { %s1388_s26 = smov (%p42_p0, %s40_s26), 0  ;;  %p63_p5 = scmp.eq.s32.totalorder %s1143_s24, 0 }
  0x12   : > { %1369 = sst [smem:[#allocation20_spill]] %s1388_s26  ;;  %p1155_p4 = por %p57_p2, %p56_p1 }
  0x13   : > { %s44_s29 = ssub.s32 %s1068_s22, %s1388_s26  ;;  %p168_p6 = scmp.eq.s32.totalorder %s1143_s24, 1 }
  0x14   : > { %p47_p7 = scmp.eq.s32.totalorder %s44_s29, 0  ;;  %p1163_p8 = por %p63_p5, %p62_p3 }
  0x15   : > { %p1167_p9 = por %p168_p6, %p56_p1  ;;  %p174_p10 = scmp.eq.s32.totalorder %s751_s25, 1 }
  0x16   : > { %s1172_s7 = scalar_select %p47_p7, %s1060_s20, %s49_s27  }
  0x17   : > { %p1174_p11 = por %p174_p10, %p62_p3  ;;  %p817_p13 = scmp.lt.s32.totalorder %s1072_s23, 2 }
  0x18   : > { %1373 = sst [smem:[#allocation21_spill]] %s1172_s7  ;;  %s1361_s9 = sand.u32 1, %s1060_s20  }
  0x19   : > { %s1183_s10 = sshll.u32 %s1361_s9, 3  ;;  %s1186_s11 = sshll.u32 %s1068_s22, 7 }
  0x1a   : > { %p1190_p0 = pnand %p817_p13, %p1155_p4  ;;  %s241_s13 = sand.u32 1, %s1072_s23  }
  0x1b   : > { %s1376_s1 = sld [smem:[#allocation22_spill]]  ;;  %s245_s17 = scalar_lea.vmem [#allocation8], %s1183_s10 }
  0x1c   : > { %s252_s25 = sshll.u32 %s245_s17, 4  ;;  %p760_p1 = scmp.ge.s32.totalorder %s1072_s23, 1  ;;  %s253_s25 = int_to_ptr.vmem [resolvable:$true] %s252_s25 }
  0x1d   : > { %p285_p2 = scmp.lt.s32.totalorder %s1072_s23, 3  ;;  %s1202_s27 = scalar_lea.sflag [#allocation9], %s241_s13 }
  0x1e   : > { %p876_p3 = pneg %p1190_p0  ;;  %s887_s28 = scalar_lea.vmem %s253_s25, 128 }
  0x1f   : > { %p888_p4 = scmp.ne.s32.totalorder %s253_s25, %s887_s28  ;;  %s1074_s29 = smov [#allocation8]  }
  0x20   : > { %s892_s9 = sshll.u32 %s1074_s29, 4  ;;  %s893_s9 = int_to_ptr.vmem [resolvable:$false] %s892_s9 }
  0x21   : > { %s250_s16 = scalar_lea.hbm %s1376_s1, %s1186_s11  ;;  %p890_p5 = pnand %p888_p4, %p876_p3 }
  0x22   : > { %s894_s14 = scalar_lea.vmem %s893_s9, 256  ;;  %p895_p7 = scmp.lt.s32.totalorder %s253_s25, %s893_s9 }
  0x23   : > { %p891_p6 = pneg %p890_p5  ;;  %p896_p10 = scmp.lt.s32.totalorder %s894_s14, %s887_s28 }
  0x25   : > { %p897_p13 = por %p896_p10, %p895_p7 }
  0x27   : > { %p898_p12 = pnand %p897_p13, %p891_p6 }
  0x29   : > { %901 = shalt.err (!%p898_p12)
}
  0x2a   : > { %806 = dma.hbm_to_vmem [thread:$0]  (!%p1190_p0), %s250_s16, 128, %s253_s25, %s1202_s27  }
  0x2b   : > { %p1216_p4 = pnand %p760_p1, %p285_p2  ;;  %s232_s17 = scalar_lea.hbm %s1355_s0, %s1186_s11 }
  0x2c   : > { %s226_s28 = scalar_lea.vmem [#allocation5], %s1183_s10  ;;  %s268_s26 = scalar_lea.hbm %s1357_s2, %s1186_s11 }
  0x2d   : > { %s234_s29 = sshll.u32 %s226_s28, 4  ;;  %s1378_s22 = sand.u32 1, %s1060_s20   ;;  %s235_s29 = int_to_ptr.vmem [resolvable:$true] %s234_s29 }
  0x2e   : > { %s223_s7 = scalar_lea.sflag [#allocation6], %s1378_s22  ;;  %s915_s16 = scalar_lea.vmem %s235_s29, 128 }
  0x2f   : > { %p916_p12 = scmp.ne.s32.totalorder %s235_s29, %s915_s16  ;;  %s1075_s25 = smov [#allocation5]  }
  0x30   : > { %s920_s23 = sshll.u32 %s1075_s25, 4  ;;  %s921_s23 = int_to_ptr.vmem [resolvable:$false] %s920_s23 }
  0x31   : > { %p918_p1 = pnand %p916_p12, %p876_p3  ;;  %s922_s9 = scalar_lea.vmem %s921_s23, 256 }
  0x32   : > { %p923_p5 = scmp.lt.s32.totalorder %s235_s29, %s921_s23  ;;  %p924_p6 = scmp.lt.s32.totalorder %s922_s9, %s915_s16 }
  0x33   : > { %p919_p2 = pneg %p918_p1 }
  0x34   : > { %p925_p7 = por %p924_p6, %p923_p5 }
  0x36   : > { %p926_p10 = pnand %p925_p7, %p919_p2 }
  0x38   : > { %929 = shalt.err (!%p926_p10)
}
  0x39   : > { %803 = dma.hbm_to_vmem [thread:$0]  (!%p1190_p0), %s232_s17, 128, %s235_s29, %s223_s7  }
  0x3a   : > { %s263_s1 = scalar_lea.vmem [#allocation10], %s1183_s10  ;;  %s1076_s28 = smov [#allocation10]  }
  0x3b   : > { %s270_s22 = sshll.u32 %s263_s1, 4  ;;  %s948_s23 = sshll.u32 %s1076_s28, 4  ;;  %s271_s22 = int_to_ptr.vmem [resolvable:$true] %s270_s22  ;;  %s949_s23 = int_to_ptr.vmem [resolvable:$false] %s948_s23 }
  0x3c   : > { %s943_s15 = scalar_lea.vmem %s271_s22, 128  ;;  %s950_s14 = scalar_lea.vmem %s949_s23, 256 }
  0x3d   : > { %p944_p13 = scmp.ne.s32.totalorder %s271_s22, %s943_s15  ;;  %p951_p2 = scmp.lt.s32.totalorder %s271_s22, %s949_s23 }
  0x3e   : > { %p952_p5 = scmp.lt.s32.totalorder %s950_s14, %s943_s15 }
  0x3f   : > { %p946_p12 = pnand %p944_p13, %p876_p3 }
  0x40   : > { %p953_p6 = por %p952_p5, %p951_p2 }
  0x41   : > { %p947_p1 = pneg %p946_p12 }
  0x43   : > { %p954_p7 = pnand %p953_p6, %p947_p1 }
  0x45   : > { %957 = shalt.err (!%p954_p7)
}
  0x46   : > { %809 = dma.hbm_to_vmem [thread:$0]  (!%p1190_p0), %s268_s26, 128, %s271_s22, %s1202_s27  }
  0x47   : > { %289 = sbr.rel (%p1216_p4) target bundleno = 799 (0x31f), region = 36  ;;  %s1251_s17 = sand.u32 (!%p1216_p4), 1, %s1056_s19  }
  0x48   : > { %s1254_s29 = sshll.u32 (!%p1216_p4), %s1251_s17, 3  ;;  %s292_s12 = scalar_lea.sflag (!%p1216_p4), [#allocation6], %s1251_s17 }
  0x49   : > { %s295_s16 = scalar_lea.vmem (!%p1216_p4), [#allocation5], %s1254_s29 }
  0x4c   : > { %1035 = dma.done.wait (%p1163_p8), %s292_s12, 128  }
  0x4d   : > { %1037 = vsyncadd (%p1163_p8), %s292_s12, 4294967168  ;;  %s300_s26 = sand.u32 1, %s1143_s24   ;;  %s304_s27 = scalar_lea.vmem [#allocation8], %s1254_s29 }
  0x4e   : > { %s301_s11 = scalar_lea.sflag [#allocation9], %s300_s26 }
  0x4f   : > { %1039 = dma.done.wait (%p1163_p8), %s301_s11, 256  }
  0x50   : > { %1041 = vsyncadd (%p1163_p8), %s301_s11, 4294967040  ;;  %v1077_v0 = vmov 0.0   ;;  %vm1078_vm0 = vmmov 0   ;;  %vm374_vm1 = vcmask 261120   ;;  %v373_v1 = vld [vmem:[%s304_s27] sm:$0xff]  ;;  %v371_v2 = vld [vmem:[%s295_s16] sm:$0xff] }
  0x51   : > { %780 = vmatprep.subr.mxu0 %v1077_v0  ;;  %782 = vmatprep.mubr.msk.f32.mxu0 %vm1078_vm0, %v1077_v0  ;;  %v372_v3 = vmul.f32 0.17677669, %v371_v2  ;;  %p362_p0 = scmp.lt.s32.totalorder %s1064_s21, 1  ;;  %v1079_v5 = vmov 0   ;;  %vm457_vm4 = vcmask 64512   ;;  %s313_s1 = scalar_lea.vmem [#allocation10], %s1254_s29 }
  0x52   : > { %785 = vmatprep.subr.mxu1 %v1077_v0  ;;  %787 = vmatprep.mubr.msk.f32.mxu1 %vm1078_vm0, %v1077_v0  ;;  %v468_v17 = vld [vmem:[%s313_s1] sm:$0xff]  ;;  %s361_s22 = scalar_lea.vmem [#allocation12], %s1254_s29  ;;  %s772_s15 = sshll.u32 %s1064_s21, 7 }
  0x53   : > { %781 = vmatpush3.xpose.msk.msra.mxu0 %vm374_vm1, %v373_v1  ;;  %s363_s24 = scalar_select %p362_p0, %s1064_s21, 1  ;;  %786 = vmatpush3.msra.mxu1 %v468_v17 }
  0x54   : > { %s577_s14 = scalar_lea.hbm %s1360_s5, %s772_s15  ;;  %s579_s7 = sshll.u32 %s361_s22, 4  ;;  %s580_s7 = int_to_ptr.vmem [resolvable:$true] %s579_s7 }
  0x55   : > { %s766_s30 = sshll.u32 %s363_s24, 1  ;;  %s551_s10 = scalar_lea.sflag [#allocation13], %s1251_s17 }
  0x56   : > { %783 = vmatmul.mubr.msk.f32.vlgmr.msra.gmra.mxu0 %vm374_vm1, %v372_v3  ;;  %s368_s9 = scalar_lea.vmem %s1358_s3, %s766_s30  ;;  %s958_s12 = scalar_lea.vmem %s580_s7, 128 }
  0x57   : > { %v451_v4 = vld [vmem:[%s368_s9] sm:$0x3]  ;;  %p959_p8 = scmp.ne.s32.totalorder %s580_s7, %s958_s12  ;;  %s1080_s16 = smov [#allocation12]  }
  0x58   : > { %vm452_vm2 = vnez %v451_v4  ;;  %s962_s26 = sshll.u32 %s1080_s16, 4  ;;  %s963_s26 = int_to_ptr.vmem [resolvable:$false] %s962_s26 }
  0x59   : > { %v453_v6 = vsel %vm452_vm2, 16843009, %v1079_v5  ;;  %p960_p3 = pnand %p959_p8, %p1167_p9  ;;  %s964_s11 = scalar_lea.vmem %s963_s26, 256 }
  0x5a   : > { %v454_v7 = vunpack.c.0.s8 %v453_v6  ;;  %p965_p10 = scmp.lt.s32.totalorder %s580_s7, %s963_s26  ;;  %p966_p13 = scmp.lt.s32.totalorder %s964_s11, %s958_s12 }
  0x5b   : > { %p961_p4 = pneg %p960_p3 }
  0x5c   : > { %vm455_vm3 = vcmp.ne.s32.totalorder %v454_v7, 0  ;;  %p967_p12 = por %p966_p13, %p965_p10 }
  0x5e   : > { %p968_p1 = pnand %p967_p12, %p961_p4 }
 0x116   : > { %v447_v8 = vpop.f32.mrf.mxu0 }
 0x117   : > { %v456_v9 = vsel %vm455_vm3, -3.4028235e+38, %v447_v8 }
 0x118   : > { %v784_v10 = vpop.f32.mrf.mxu0  ;;  %v458_v11 = vsel %vm457_vm4, %v456_v9, -inf }
 0x119   : > { %459 = vmax.xlane.f32.xlu0 %v458_v11 }
 0x1a2   : > { %v460_v12 = vpop.xlane.xlu0 %459 }
 0x1a3   : > { %v461_v13 = vsub.f32 %v456_v9, %v460_v12 }
 0x1a5   : > { %v462_v14 = vmul.f32 1.442695, %v461_v13 }
 0x1a7   : > { %870 = vpow2.f32 %v462_v14 }
 0x1b4   : > { %v871_v15 = vpop.eup %870 }
 0x1b5   : > { %v464_v16 = vsel %vm457_vm4, %v871_v15, 0.0 }
 0x1b6   : > { %465 = vadd.xlane.f32.xlu0 %v464_v16 }
 0x23f   : > { %v466_v18 = vpop.xlane.xlu0 %465 }
 0x240   : > { %872 = vrcp.f32 %v466_v18 }
 0x24d   : > { %v873_v19 = vpop.eup %872 }
 0x24e   : > { %v469_v20 = vmul.f32 %v873_v19, %v871_v15 }
 0x250   : > { %788 = vmatmul.mubr.msk.f32.vlgmr.msra.gmra.mxu1 %vm457_vm4, %v469_v20  ;;  %543 = vst.msk [vmem:[%s361_s22] sm:$0xff] %vm457_vm4, %v469_v20 }
 0x251   : > { %971 = shalt.err (!%p968_p1)
}
 0x252   : > { %s972_s27 = scalar_lea.hbm %s577_s14, 128  ;;  %s976_s13 = scalar_lea.hbm %s1360_s5, 256 }
 0x253   : > { %p973_p2 = scmp.ne.s32.totalorder %s577_s14, %s972_s27  ;;  %p977_p7 = scmp.lt.s32.totalorder %s577_s14, %s1360_s5 }
 0x254   : > { %p978_p0 = scmp.lt.s32.totalorder %s976_s13, %s972_s27 }
 0x255   : > { %p974_p5 = pnand %p973_p2, %p1167_p9 }
 0x256   : > { %p979_p8 = por %p978_p0, %p977_p7 }
 0x257   : > { %p975_p6 = pneg %p974_p5 }
 0x259   : > { %p980_p3 = pnand %p979_p8, %p975_p6 }
 0x25b   : > { %983 = shalt.err (!%p980_p3)
}
 0x25c   : > { %797 = dma.vmem_to_hbm [thread:$0]  (%p1167_p9), %s580_s7, 128, %s577_s14, %s551_s10  }
 0x25d   : > { %s354_s1 = scalar_lea.vmem [#allocation11], %s1254_s29  ;;  %s1306_s12 = scalar_lea.hbm %s1359_s4, %s772_s15 }
 0x25e   : > { %s565_s22 = sshll.u32 %s354_s1, 4  ;;  %s546_s16 = scalar_lea.sflag [#allocation7], %s1251_s17  ;;  %s1308_s22 = int_to_ptr.vmem [resolvable:$true] %s565_s22 }
 0x25f   : > { %s984_s26 = scalar_lea.vmem %s1308_s22, 128  ;;  %s1081_s21 = smov [#allocation11]  }
 0x260   : > { %p985_p4 = scmp.ne.s32.totalorder %s1308_s22, %s984_s26  ;;  %s988_s29 = sshll.u32 %s1081_s21, 4  ;;  %s989_s29 = int_to_ptr.vmem [resolvable:$false] %s988_s29 }
 0x261   : > { %s990_s15 = scalar_lea.vmem %s989_s29, 256  ;;  %p991_p12 = scmp.lt.s32.totalorder %s1308_s22, %s989_s29 }
 0x262   : > { %p986_p10 = pnand %p985_p4, %p1167_p9  ;;  %p992_p1 = scmp.lt.s32.totalorder %s990_s15, %s984_s26 }
 0x264   : > { %p987_p13 = pneg %p986_p10  ;;  %p993_p2 = por %p992_p1, %p991_p12 }
 0x266   : > { %p994_p5 = pnand %p993_p2, %p987_p13 }
 0x310   : > { %v539_v21 = vpop.f32.mrf.mxu1 }
 0x311   : > { %544 = vst.msk [vmem:[%s354_s1] sm:$0xff] %vm374_vm1, %v539_v21 }
 0x312   : > { %v789_v22 = vpop.f32.mrf.mxu1 }
 0x313   : > { %997 = shalt.err (!%p994_p5)
}
 0x314   : > { %s998_s14 = scalar_lea.hbm %s1306_s12, 128  ;;  %s1002_s10 = scalar_lea.hbm %s1359_s4, 256 }
 0x315   : > { %p999_p6 = scmp.ne.s32.totalorder %s1306_s12, %s998_s14  ;;  %p1003_p8 = scmp.lt.s32.totalorder %s1306_s12, %s1359_s4 }
 0x316   : > { %p1004_p3 = scmp.lt.s32.totalorder %s1002_s10, %s998_s14 }
 0x317   : > { %p1000_p7 = pnand %p999_p6, %p1167_p9 }
 0x318   : > { %p1005_p4 = por %p1004_p3, %p1003_p8 }
 0x319   : > { %p1001_p0 = pneg %p1000_p7 }
 0x31b   : > { %p1006_p10 = pnand %p1005_p4, %p1001_p0 }
 0x31d   : > { %1009 = shalt.err (!%p1006_p10)
}
 0x31e   : > { %796 = dma.vmem_to_hbm [thread:$0]  (%p1167_p9), %s1308_s22, 128, %s1306_s12, %s546_s16  }
 0x31f PF: > { %s1379_s24 = sld [smem:[#allocation19_spill]]  ;;  %s591_s30 = sand.u32 1, %s1052_s18  }
 0x320   : > { %s592_s13 = scalar_lea.sflag [#allocation7], %s591_s30 }
 0x325   : > { %p1380_p13 = scmp.ge.s32.totalorder %s1379_s24, 2 }
 0x327   : > { %p811_p12 = pnand %p1380_p13, %p1174_p11 }
 0x329   : > { %p812_p1 = pneg %p811_p12 }
 0x32b   : > { %1043 = dma.done.wait (%p812_p1), %s592_s13, 128  }
 0x32c   : > { %1045 = vsyncadd (%p812_p1), %s592_s13, 4294967168  ;;  %s601_s25 = scalar_lea.sflag [#allocation13], %s591_s30 }
 0x32d   : > { %1047 = dma.done.wait (%p812_p1), %s601_s25, 128  }
 0x32e   : > { %1049 = vsyncadd (%p812_p1), %s601_s25, 4294967168  ;;  %s28_s23 = sadd.s32 1, %s1379_s24   ;;  %s1381_s6 = sld [smem:[#allocation21_spill]] }
 0x32f   : > { %p25_p2 = scmp.ge.s32.totalorder %s28_s23, 4   ;;  %s1382_s21 = sld [smem:[#allocation18_spill]] }
 0x330   : > { %s1383_s22 = sld [smem:[#allocation20_spill]]  ;;  %s1384_s18 = smov %s1056_s19 }
 0x331   : > { %s1385_s19 = smov %s1060_s20  ;;  %27 = sbr.rel (!%p25_p2) target bundleno = 12 (0xc), region = 125 }
 0x334   : > { %s1386_s20 = smov %s1381_s6 }
 0x336   :  { %606 = vsyncpa [#allocation6], 1 }
 0x337   :  { %608 = vsyncpa [#allocation6 + $0x1], 1 }
 0x338   :  { %609 = vsyncpa [#allocation9], 1 }
 0x339   :  { %611 = vsyncpa [#allocation9 + $0x1], 1 }
 0x33a   :  { %612 = vsyncpa [#allocation7], 1 }
 0x33b   :  { %614 = vsyncpa [#allocation7 + $0x1], 1 }
 0x33c   :  { %615 = vsyncpa [#allocation13], 1 }
 0x33d   :  { %617 = vsyncpa [#allocation13 + $0x1], 1 }

</bundles_post_ra>
